<compile_context>
chip_gen: v7x
topology: tpu7x:2x2x1
jax: 0.10.0
libtpu: 0.0.40
codegen_flags: <defaults>
</compile_context>

<pallas_src>
import functools

import jax
import jax.numpy as jnp
from jax.experimental import pallas as pl
from jax.experimental.pallas import tpu as pltpu


def _round_up(v, m):
    return (v + m - 1) // m * m


def _conv2d_flat_kernel(x_ref, w_ref, b_ref, o_ref, *, kh, kw, wp, t):
    # x_ref: (C, L)          zero-padded image, rows flattened (L = Hp*Wp + KW-1)
    # w_ref: (KH*KW, OCt, C) per-tap weight slices (OC padded / tiled)
    # b_ref: (OCt, 1)        bias column
    # o_ref: (OCt, T)        stride-1 conv outputs, row-major with padded row
    #                        width Wp (garbage columns sliced off in the wrapper)
    acc = jnp.zeros(o_ref.shape, jnp.float32)
    for i in range(kh):                      # static unroll: KH*KW accumulating matmuls
        for j in range(kw):
            off = i * wp + j                 # static element offset into the flat axis
            win = x_ref[:, pl.ds(off, t)]    # (C, T) contiguous lane window, no reshape
            acc = acc + jnp.dot(w_ref[i * kw + j], win,
                                preferred_element_type=jnp.float32)
    o_ref[...] = (acc + b_ref[...]).astype(o_ref.dtype)


@functools.partial(jax.jit, static_argnames=("stride", "padding"))
def conv2d_pallas(x, weight, bias, *, stride=1, padding=0):
    """Equivalent of F.conv2d(x, weight, bias, stride, padding) for NCHW x."""
    x = x.astype(jnp.float32)
    weight = weight.astype(jnp.float32)
    bias = bias.astype(jnp.float32)

    b, c, h, w = x.shape
    oc, cin, kh, kw = weight.shape
    assert cin == c, "in_channel mismatch"
    s, p = stride, padding

    hp, wp = h + 2 * p, w + 2 * p
    oh1, ow1 = hp - kh + 1, wp - kw + 1          # stride-1 output extents
    t_out = oh1 * wp                             # flattened, lane-dense output width
    l_flat = hp * wp + (kw - 1)                  # tail pad keeps every tap slice in-bounds

    # --- cheap glue (no patch matrix in HBM) ---
    xp = jnp.pad(x, ((0, 0), (0, 0), (p, p), (p, p)))          # (B, C, Hp, Wp)
    x_flat = xp.reshape(b, c, hp * wp)                         # free reshape
    x_flat = jnp.pad(x_flat, ((0, 0), (0, 0), (0, kw - 1)))    # (B, C, L)

    # OC tiling: whole (8-aligned) OC when small; 256-wide tiles when large
    # (keeps the v6e/v7x 256x256 MXU busy and the v7x 64 MiB VMEM budget bounded).
    if oc > 256:
        ocp, toc = _round_up(oc, 256), 256
    else:
        ocp = toc = _round_up(oc, 8)

    # w_taps[i*KW + j, o, ci] = weight[o, ci, i, j]
    w_taps = jnp.transpose(weight, (2, 3, 0, 1)).reshape(kh * kw, oc, c)
    w_taps = jnp.pad(w_taps, ((0, 0), (0, ocp - oc), (0, 0)))  # (KH*KW, OCp, C)
    b_col = jnp.pad(bias, (0, ocp - oc)).reshape(ocp, 1)       # (OCp, 1)

    kernel = functools.partial(_conv2d_flat_kernel, kh=kh, kw=kw, wp=wp, t=t_out)

    out_full = pl.pallas_call(
        kernel,
        out_shape=jax.ShapeDtypeStruct((b, ocp, t_out), jnp.float32),
        grid=(b, ocp // toc),
        in_specs=[
            # whole padded image of one batch element (block index constant over OC tiles)
            pl.BlockSpec((None, c, l_flat), lambda bi, ti: (bi, 0, 0)),
            # per-tap weights / bias: constant over batch -> DMA'd once per OC tile.
            # (For very large OC, pipeline_mode=pl.Buffered(1) would also drop the
            #  superfluous double buffer of this resident block.)
            pl.BlockSpec((kh * kw, toc, c), lambda bi, ti: (0, ti, 0)),
            pl.BlockSpec((toc, 1), lambda bi, ti: (ti, 0)),
        ],
        out_specs=pl.BlockSpec((None, toc, t_out), lambda bi, ti: (bi, ti, 0)),
        compiler_params=pltpu.CompilerParams(
            # both grid axes independent -> megacore-shardable on v7x
            dimension_semantics=("parallel", "parallel"),
            # above the 16/32 MiB default scoped limits, with headroom under v7x's 64 MiB
            vmem_limit_bytes=48 * 1024 * 1024,
        ),
    )(x_flat, w_taps, b_col)

    # (B, OCp, OH1*Wp) -> NCHW: free reshape + a single strided slice that drops
    # the padded-width garbage columns / OC padding and applies the stride.
    out = out_full.reshape(b, ocp, oh1, wp)[:, :oc, ::s, 0:ow1:s]
    return out


def _reference_conv2d(x, weight, bias, stride, padding):
    out = jax.lax.conv_general_dilated(
        x, weight,
        window_strides=(stride, stride),
        padding=[(padding, padding), (padding, padding)],
        dimension_numbers=("NCHW", "OIHW", "NCHW"),
    )
    return out + bias.reshape(1, -1, 1, 1)


if __name__ == "__main__":
    # Shapes consistent with Conv2dLayer(in_channel=4, out_channel=8,
    # kernel_size=3, stride=1, padding=1) applied to x of shape [2, 4, 16, 16].
    in_channel, out_channel, kernel_size, stride, padding = 4, 8, 3, 1, 1
    batch, height, width = 2, 16, 16

    key = jax.random.PRNGKey(0)
    kx, kw_, kb = jax.random.split(key, 3)

    x = jax.random.normal(kx, (batch, in_channel, height, width), dtype=jnp.float32)
    # Deterministic synthetic parameters (exact init values don't matter for
    # forward-pass semantics).
    fan_in = in_channel * kernel_size * kernel_size
    bound = 1.0 / (fan_in ** 0.5)
    weight = jax.random.uniform(
        kw_, (out_channel, in_channel, kernel_size, kernel_size),
        minval=-bound, maxval=bound, dtype=jnp.float32)
    bias = jax.random.uniform(
        kb, (out_channel,), minval=-bound, maxval=bound, dtype=jnp.float32)

    out = conv2d_pallas(x, weight, bias, stride=stride, padding=padding)
    out = jax.block_until_ready(out)

    ref = _reference_conv2d(x, weight, bias, stride, padding)
    assert out.shape == (batch, out_channel, height, width), out.shape
    assert jnp.allclose(out, ref, atol=1e-4, rtol=1e-4), float(jnp.max(jnp.abs(out - ref)))

    print("KERNEL_OK")
</pallas_src>

<mosaic_0001>
module attributes {stable_mosaic.version = 11 : i64} {
  func.func @_conv2d_flat_kernel(%arg0: i32, %arg1: i32, %arg2: memref<1x4x326xf32, #tpu.memory_space<vmem>>, %arg3: memref<9x8x4xf32, #tpu.memory_space<vmem>>, %arg4: memref<8x1xf32, #tpu.memory_space<vmem>>, %arg5: memref<1x8x288xf32, #tpu.memory_space<vmem>>) attributes {dimension_semantics = [#tpu.dimension_semantics<parallel>, #tpu.dimension_semantics<parallel>], iteration_bounds = array<i64: 2, 1>, scalar_prefetch = 0 : i64, scratch_operands = 0 : i64, tpu.core_type = #tpu.core_type<tc>, window_params = [{transform_indices = @transform_0, window_bounds = array<i64: 1, 4, 326>}, {transform_indices = @transform_1, window_bounds = array<i64: 9, 8, 4>}, {transform_indices = @transform_2, window_bounds = array<i64: 8, 1>}, {transform_indices = @transform_3, window_bounds = array<i64: 1, 8, 288>}]} {
    %cst = arith.constant 0.000000e+00 : f32
    %0 = vector.broadcast %cst : f32 to vector<8x288xf32>
    %c0 = arith.constant 0 : index
    %c0_0 = arith.constant 0 : index
    %c0_1 = arith.constant 0 : index
    %1 = vector.load %arg2[%c0, %c0_0, %c0_1] : memref<1x4x326xf32, #tpu.memory_space<vmem>>, vector<1x4x288xf32>
    %2 = vector.shape_cast %1 : vector<1x4x288xf32> to vector<4x288xf32>
    %c0_2 = arith.constant 0 : index
    %c0_3 = arith.constant 0 : index
    %c0_4 = arith.constant 0 : index
    %3 = vector.load %arg3[%c0_2, %c0_3, %c0_4] : memref<9x8x4xf32, #tpu.memory_space<vmem>>, vector<1x8x4xf32>
    %4 = vector.shape_cast %3 : vector<1x8x4xf32> to vector<8x4xf32>
    %cst_5 = arith.constant dense<0.000000e+00> : vector<8x288xf32>
    %5 = tpu.matmul %4, %2, %cst_5 {dimension_numbers = #tpu.dot_dimension_numbers<[1], [0], [0], [1], [0, 0, 1, 1], [], []>} : vector<8x4xf32>, vector<4x288xf32>, vector<8x288xf32> -> vector<8x288xf32>
    %6 = arith.addf %0, %5 : vector<8x288xf32>
    %c0_6 = arith.constant 0 : index
    %c0_7 = arith.constant 0 : index
    %c1 = arith.constant 1 : index
    %7 = vector.load %arg2[%c0_6, %c0_7, %c1] : memref<1x4x326xf32, #tpu.memory_space<vmem>>, vector<1x4x288xf32>
    %8 = vector.shape_cast %7 : vector<1x4x288xf32> to vector<4x288xf32>
    %c1_8 = arith.constant 1 : index
    %c0_9 = arith.constant 0 : index
    %c0_10 = arith.constant 0 : index
    %9 = vector.load %arg3[%c1_8, %c0_9, %c0_10] : memref<9x8x4xf32, #tpu.memory_space<vmem>>, vector<1x8x4xf32>
    %10 = vector.shape_cast %9 : vector<1x8x4xf32> to vector<8x4xf32>
    %cst_11 = arith.constant dense<0.000000e+00> : vector<8x288xf32>
    %11 = tpu.matmul %10, %8, %cst_11 {dimension_numbers = #tpu.dot_dimension_numbers<[1], [0], [0], [1], [0, 0, 1, 1], [], []>} : vector<8x4xf32>, vector<4x288xf32>, vector<8x288xf32> -> vector<8x288xf32>
    %12 = arith.addf %6, %11 : vector<8x288xf32>
    %c0_12 = arith.constant 0 : index
    %c0_13 = arith.constant 0 : index
    %c2 = arith.constant 2 : index
    %13 = vector.load %arg2[%c0_12, %c0_13, %c2] : memref<1x4x326xf32, #tpu.memory_space<vmem>>, vector<1x4x288xf32>
    %14 = vector.shape_cast %13 : vector<1x4x288xf32> to vector<4x288xf32>
    %c2_14 = arith.constant 2 : index
    %c0_15 = arith.constant 0 : index
    %c0_16 = arith.constant 0 : index
    %15 = vector.load %arg3[%c2_14, %c0_15, %c0_16] : memref<9x8x4xf32, #tpu.memory_space<vmem>>, vector<1x8x4xf32>
    %16 = vector.shape_cast %15 : vector<1x8x4xf32> to vector<8x4xf32>
    %cst_17 = arith.constant dense<0.000000e+00> : vector<8x288xf32>
    %17 = tpu.matmul %16, %14, %cst_17 {dimension_numbers = #tpu.dot_dimension_numbers<[1], [0], [0], [1], [0, 0, 1, 1], [], []>} : vector<8x4xf32>, vector<4x288xf32>, vector<8x288xf32> -> vector<8x288xf32>
    %18 = arith.addf %12, %17 : vector<8x288xf32>
    %c0_18 = arith.constant 0 : index
    %c0_19 = arith.constant 0 : index
    %c18 = arith.constant 18 : index
    %19 = vector.load %arg2[%c0_18, %c0_19, %c18] : memref<1x4x326xf32, #tpu.memory_space<vmem>>, vector<1x4x288xf32>
    %20 = vector.shape_cast %19 : vector<1x4x288xf32> to vector<4x288xf32>
    %c3 = arith.constant 3 : index
    %c0_20 = arith.constant 0 : index
    %c0_21 = arith.constant 0 : index
    %21 = vector.load %arg3[%c3, %c0_20, %c0_21] : memref<9x8x4xf32, #tpu.memory_space<vmem>>, vector<1x8x4xf32>
    %22 = vector.shape_cast %21 : vector<1x8x4xf32> to vector<8x4xf32>
    %cst_22 = arith.constant dense<0.000000e+00> : vector<8x288xf32>
    %23 = tpu.matmul %22, %20, %cst_22 {dimension_numbers = #tpu.dot_dimension_numbers<[1], [0], [0], [1], [0, 0, 1, 1], [], []>} : vector<8x4xf32>, vector<4x288xf32>, vector<8x288xf32> -> vector<8x288xf32>
    %24 = arith.addf %18, %23 : vector<8x288xf32>
    %c0_23 = arith.constant 0 : index
    %c0_24 = arith.constant 0 : index
    %c19 = arith.constant 19 : index
    %25 = vector.load %arg2[%c0_23, %c0_24, %c19] : memref<1x4x326xf32, #tpu.memory_space<vmem>>, vector<1x4x288xf32>
    %26 = vector.shape_cast %25 : vector<1x4x288xf32> to vector<4x288xf32>
    %c4 = arith.constant 4 : index
    %c0_25 = arith.constant 0 : index
    %c0_26 = arith.constant 0 : index
    %27 = vector.load %arg3[%c4, %c0_25, %c0_26] : memref<9x8x4xf32, #tpu.memory_space<vmem>>, vector<1x8x4xf32>
    %28 = vector.shape_cast %27 : vector<1x8x4xf32> to vector<8x4xf32>
    %cst_27 = arith.constant dense<0.000000e+00> : vector<8x288xf32>
    %29 = tpu.matmul %28, %26, %cst_27 {dimension_numbers = #tpu.dot_dimension_numbers<[1], [0], [0], [1], [0, 0, 1, 1], [], []>} : vector<8x4xf32>, vector<4x288xf32>, vector<8x288xf32> -> vector<8x288xf32>
    %30 = arith.addf %24, %29 : vector<8x288xf32>
    %c0_28 = arith.constant 0 : index
    %c0_29 = arith.constant 0 : index
    %c20 = arith.constant 20 : index
    %31 = vector.load %arg2[%c0_28, %c0_29, %c20] : memref<1x4x326xf32, #tpu.memory_space<vmem>>, vector<1x4x288xf32>
    %32 = vector.shape_cast %31 : vector<1x4x288xf32> to vector<4x288xf32>
    %c5 = arith.constant 5 : index
    %c0_30 = arith.constant 0 : index
    %c0_31 = arith.constant 0 : index
    %33 = vector.load %arg3[%c5, %c0_30, %c0_31] : memref<9x8x4xf32, #tpu.memory_space<vmem>>, vector<1x8x4xf32>
    %34 = vector.shape_cast %33 : vector<1x8x4xf32> to vector<8x4xf32>
    %cst_32 = arith.constant dense<0.000000e+00> : vector<8x288xf32>
    %35 = tpu.matmul %34, %32, %cst_32 {dimension_numbers = #tpu.dot_dimension_numbers<[1], [0], [0], [1], [0, 0, 1, 1], [], []>} : vector<8x4xf32>, vector<4x288xf32>, vector<8x288xf32> -> vector<8x288xf32>
    %36 = arith.addf %30, %35 : vector<8x288xf32>
    %c0_33 = arith.constant 0 : index
    %c0_34 = arith.constant 0 : index
    %c36 = arith.constant 36 : index
    %37 = vector.load %arg2[%c0_33, %c0_34, %c36] : memref<1x4x326xf32, #tpu.memory_space<vmem>>, vector<1x4x288xf32>
    %38 = vector.shape_cast %37 : vector<1x4x288xf32> to vector<4x288xf32>
    %c6 = arith.constant 6 : index
    %c0_35 = arith.constant 0 : index
    %c0_36 = arith.constant 0 : index
    %39 = vector.load %arg3[%c6, %c0_35, %c0_36] : memref<9x8x4xf32, #tpu.memory_space<vmem>>, vector<1x8x4xf32>
    %40 = vector.shape_cast %39 : vector<1x8x4xf32> to vector<8x4xf32>
    %cst_37 = arith.constant dense<0.000000e+00> : vector<8x288xf32>
    %41 = tpu.matmul %40, %38, %cst_37 {dimension_numbers = #tpu.dot_dimension_numbers<[1], [0], [0], [1], [0, 0, 1, 1], [], []>} : vector<8x4xf32>, vector<4x288xf32>, vector<8x288xf32> -> vector<8x288xf32>
    %42 = arith.addf %36, %41 : vector<8x288xf32>
    %c0_38 = arith.constant 0 : index
    %c0_39 = arith.constant 0 : index
    %c37 = arith.constant 37 : index
    %43 = vector.load %arg2[%c0_38, %c0_39, %c37] : memref<1x4x326xf32, #tpu.memory_space<vmem>>, vector<1x4x288xf32>
    %44 = vector.shape_cast %43 : vector<1x4x288xf32> to vector<4x288xf32>
    %c7 = arith.constant 7 : index
    %c0_40 = arith.constant 0 : index
    %c0_41 = arith.constant 0 : index
    %45 = vector.load %arg3[%c7, %c0_40, %c0_41] : memref<9x8x4xf32, #tpu.memory_space<vmem>>, vector<1x8x4xf32>
    %46 = vector.shape_cast %45 : vector<1x8x4xf32> to vector<8x4xf32>
    %cst_42 = arith.constant dense<0.000000e+00> : vector<8x288xf32>
    %47 = tpu.matmul %46, %44, %cst_42 {dimension_numbers = #tpu.dot_dimension_numbers<[1], [0], [0], [1], [0, 0, 1, 1], [], []>} : vector<8x4xf32>, vector<4x288xf32>, vector<8x288xf32> -> vector<8x288xf32>
    %48 = arith.addf %42, %47 : vector<8x288xf32>
    %c0_43 = arith.constant 0 : index
    %c0_44 = arith.constant 0 : index
    %c38 = arith.constant 38 : index
    %49 = vector.load %arg2[%c0_43, %c0_44, %c38] : memref<1x4x326xf32, #tpu.memory_space<vmem>>, vector<1x4x288xf32>
    %50 = vector.shape_cast %49 : vector<1x4x288xf32> to vector<4x288xf32>
    %c8 = arith.constant 8 : index
    %c0_45 = arith.constant 0 : index
    %c0_46 = arith.constant 0 : index
    %51 = vector.load %arg3[%c8, %c0_45, %c0_46] : memref<9x8x4xf32, #tpu.memory_space<vmem>>, vector<1x8x4xf32>
    %52 = vector.shape_cast %51 : vector<1x8x4xf32> to vector<8x4xf32>
    %cst_47 = arith.constant dense<0.000000e+00> : vector<8x288xf32>
    %53 = tpu.matmul %52, %50, %cst_47 {dimension_numbers = #tpu.dot_dimension_numbers<[1], [0], [0], [1], [0, 0, 1, 1], [], []>} : vector<8x4xf32>, vector<4x288xf32>, vector<8x288xf32> -> vector<8x288xf32>
    %54 = arith.addf %48, %53 : vector<8x288xf32>
    %c0_48 = arith.constant 0 : index
    %c0_49 = arith.constant 0 : index
    %55 = vector.load %arg4[%c0_48, %c0_49] : memref<8x1xf32, #tpu.memory_space<vmem>>, vector<8x1xf32>
    %56 = vector.broadcast %55 : vector<8x1xf32> to vector<8x288xf32>
    %57 = arith.addf %54, %56 : vector<8x288xf32>
    %c0_50 = arith.constant 0 : index
    %c0_51 = arith.constant 0 : index
    %c0_52 = arith.constant 0 : index
    %58 = vector.load %arg5[%c0_50, %c0_51, %c0_52] : memref<1x8x288xf32, #tpu.memory_space<vmem>>, vector<1x8x288xf32>
    %59 = vector.shape_cast %58 : vector<1x8x288xf32> to vector<8x288xf32>
    %60 = vector.shape_cast %57 : vector<8x288xf32> to vector<1x8x288xf32>
    tpu.vector_store %arg5[%c0_50, %c0_51, %c0_52], %60 {strides = array<i32>} : memref<1x8x288xf32, #tpu.memory_space<vmem>>, vector<1x8x288xf32>,
    return
  }
  func.func @transform_0(%arg0: i32, %arg1: i32) -> (i32, i32, i32) {
    %c0_i32 = arith.constant 0 : i32
    %c0_i32_0 = arith.constant 0 : i32
    %c0_i32_1 = arith.constant 0 : i32
    return %arg0, %c0_i32, %c0_i32_0 : i32, i32, i32
  }
  func.func @transform_1(%arg0: i32, %arg1: i32) -> (i32, i32, i32) {
    %c0_i32 = arith.constant 0 : i32
    %c0_i32_0 = arith.constant 0 : i32
    %c0_i32_1 = arith.constant 0 : i32
    return %c0_i32, %arg1, %c0_i32_0 : i32, i32, i32
  }
  func.func @transform_2(%arg0: i32, %arg1: i32) -> (i32, i32) {
    %c0_i32 = arith.constant 0 : i32
    %c0_i32_0 = arith.constant 0 : i32
    return %arg1, %c0_i32 : i32, i32
  }
  func.func @transform_3(%arg0: i32, %arg1: i32) -> (i32, i32, i32) {
    %c0_i32 = arith.constant 0 : i32
    %c0_i32_0 = arith.constant 0 : i32
    return %arg0, %arg1, %c0_i32 : i32, i32, i32
  }
}

</mosaic_0001>

<bundles_post_ra>
// kernel: conv2d_pallas.1
= control target key start
LH: loop header
LB: loop body
LE: loop exit
PB: predicated region body
PF: predicated region fallthrough
CT: control target
= control target key end

     0   :  { %s2093_s12 = smov 0   ;;  %s2095_s13 = smov 0   ;;  %s2279_s0 = inlined_call_operand.vmem [shape: f32[2,4,326], index: 0, kind: input, shape index: {}]   ;;  %s2280_s1 = inlined_call_operand.vmem [shape: f32[9,8,4], index: 1, kind: input, shape index: {}]   ;;  %s2281_s2 = inlined_call_operand.vmem [shape: f32[8,1], index: 2, kind: input, shape index: {}]   ;;  %s2282_s3 = inlined_call_operand.vmem [shape: f32[2,8,288], index: 3, kind: output, shape index: {}]  }
   0x1   :  { %s2097_s14 = smov 0  }
   0x2 LB: > { %s25_s15 = sadd.s32 1, %s2056_s13  ;;  %p1862_p0 = scmp.ge.s32.totalorder %s2060_s14, 1  ;;  %s2060_s14 = sphi %s2097_s14, %s13_s14   ;;  %s2056_s13 = sphi %s2095_s13, %s2284_s13   ;;  %s2052_s12 = sphi %s2093_s12, %s2283_s12  }
   0x3   : > { %p27_p1 = scmp.ge.s32.totalorder %s25_s15, 2  ;;  %p169_p2 = scmp.lt.s32.totalorder %s2060_s14, 3 }
   0x5   : > { %s2286_s15 = smov (%p27_p1, %s25_s15), 0  ;;  %p170_p3 = pnand %p1862_p0, %p169_p2 }
   0x6   : > { %p205_p4 = scmp.lt.s32.totalorder (!%p170_p3), %s2052_s12, 1  ;;  %v2062_v0 = vmov (!%p170_p3), 0.0   ;;  %vm2063_vm0 = vmmov (!%p170_p3), 0   ;;  %s2064_s20 = smov (!%p170_p3), 127   ;;  %v1729_v11 = vld [vmem:[%s2281_s2] sm:$0xff] (!%p170_p3)  ;;  %v2072_v12 = vmov (!%p170_p3), 0  }
   0x7   : > { %173 = sbr.rel (%p170_p3) target bundleno = 423 (0x1a7), region = 32  ;;  %1938 = vmatprep.subr.mxu1 (!%p170_p3), %v2062_v0  ;;  %319 = vmatprep.mubr.f32.mxu0 (!%p170_p3), %v2062_v0  ;;  %s2065_s21 = smov (!%p170_p3), 126   ;;  %vm248_vm1 = vcmask (!%p170_p3), 1043456   ;;  %vm241_vm2 = vcmask (!%p170_p3), 1039360   ;;  %v1865_v18 = vld [vmem:[%s2280_s1 + $0x8] sm:$0xff] (!%p170_p3)  ;;  %vm244_vm3 = vcmask (!%p170_p3), 31744  }
   0x8   : > { %1940 = vmatprep.mubr.msk.f32.mxu1 (!%p170_p3), %vm2063_vm0, %v2062_v0  ;;  %s2066_s22 = smov (!%p170_p3), 110   ;;  %s2067_s23 = smov (!%p170_p3), 109   ;;  %2036 = vset.pattern.permute.xlu0 (!%p170_p3), %v2072_v12  ;;  %vm559_vm4 = vcmask (!%p170_p3), 1031168   ;;  %v229_v24 = vld [vmem:[%s2280_s1] sm:$0xff] (!%p170_p3)  ;;  %vm728_vm5 = vcmask (!%p170_p3), 900096   ;;  %v1876_v29 = vld [vmem:[%s2280_s1 + $0x10] sm:$0xff] (!%p170_p3) }
   0x9   : > { %s2068_s24 = smov (!%p170_p3), 108   ;;  %s2069_s25 = smov (!%p170_p3), 92   ;;  %v1882_v31 = vld [vmem:[%s2280_s1 + $0x18] sm:$0xff] (!%p170_p3)  ;;  %vm897_vm6 = vcmask (!%p170_p3), 891904   ;;  %v1888_v34 = vld [vmem:[%s2280_s1 + $0x20] sm:$0xff] (!%p170_p3)  ;;  %v1894_v39 = vld [vmem:[%s2280_s1 + $0x28] sm:$0xff] (!%p170_p3) }
   0xa   : > { %s2070_s26 = smov (!%p170_p3), 91   ;;  %s2071_s27 = smov (!%p170_p3), 90   ;;  %vm1066_vm7 = vcmask (!%p170_p3), 883712   ;;  %v1900_v46 = vld [vmem:[%s2280_s1 + $0x30] sm:$0xff] (!%p170_p3)  ;;  %vm1235_vm8 = vcmask (!%p170_p3), 752640   ;;  %v1906_v49 = vld [vmem:[%s2280_s1 + $0x38] sm:$0xff] (!%p170_p3) }
   0xb   : > { %v1912_v53 = vld [vmem:[%s2280_s1 + $0x40] sm:$0xff] (!%p170_p3)  ;;  %vm1404_vm9 = vcmask (!%p170_p3), 744448   ;;  %vm1573_vm10 = vcmask (!%p170_p3), 736256   ;;  %vm1740_vm11 = vcmask (!%p170_p3), 261120  }
   0xe   : > { %s2288_s12 = smov (!%p205_p4, %s2052_s12), 1 }
   0xf   : > { %s1999_s16 = smul.u32 12, %s2288_s12 }
  0x11   : > { %s2119_s19 = scalar_lea.vmem %s2279_s0, %s1999_s16 }
  0x12   : > { %v2124_v1 = vld [vmem:[%s2119_s19] sm:$0xff]  ;;  %v2130_v3 = vld [vmem:[%s2119_s19 + $0x8] sm:$0xf] }
  0x13   : > { %235 = vrot.lane.b32.xlu1 %v2124_v1, %s2064_s20  ;;  %v234_v2 = vcombine.high %v2124_v1, %v2124_v1  ;;  %v547_v4 = vld [vmem:[%s2119_s19 + $0x8] sm:$0xf] }
  0x14   : > { %v716_v5 = vld [vmem:[%s2119_s19 + $0x8] sm:$0xf] }
  0x15   : > { %237 = vrot.lane.b32.xlu0 %v234_v2, %s2064_s20  ;;  %v885_v6 = vld [vmem:[%s2119_s19 + $0x8] sm:$0xf] }
  0x16   : > { %v1054_v7 = vld [vmem:[%s2119_s19 + $0x8] sm:$0xf] }
  0x17   : > { %555 = vrot.lane.b32.xlu1 %v234_v2, %s2065_s21  ;;  %v1223_v8 = vld [vmem:[%s2119_s19 + $0x8] sm:$0xf] }
  0x18   : > { %v1392_v9 = vld [vmem:[%s2119_s19 + $0x8] sm:$0xf] }
  0x19   : > { %239 = vrot.lane.b32.xlu0 %v2130_v3, %s2064_s20  ;;  %v1561_v10 = vld [vmem:[%s2119_s19 + $0x8] sm:$0xf] }
  0x1b   : > { %553 = vrot.lane.b32.xlu1 %v2124_v1, %s2065_s21 }
  0x1d   : > { %557 = vrot.lane.b32.xlu0 %v547_v4, %s2065_s21 }
  0x1f   : > { %726 = vrot.lane.b32.xlu1 %v716_v5, %s2066_s22 }
  0x21   : > { %724 = vrot.lane.b32.xlu0 %v234_v2, %s2066_s22 }
  0x23   : > { %893 = vrot.lane.b32.xlu1 %v234_v2, %s2067_s23 }
  0x25   : > { %722 = vrot.lane.b32.xlu0 %v2124_v1, %s2066_s22 }
  0x27   : > { %891 = vrot.lane.b32.xlu1 %v2124_v1, %s2067_s23 }
  0x29   : > { %895 = vrot.lane.b32.xlu0 %v885_v6, %s2067_s23 }
  0x2b   : > { %1064 = vrot.lane.b32.xlu1 %v1054_v7, %s2068_s24 }
  0x2d   : > { %1062 = vrot.lane.b32.xlu0 %v234_v2, %s2068_s24 }
  0x2f   : > { %1231 = vrot.lane.b32.xlu1 %v234_v2, %s2069_s25 }
  0x31   : > { %1060 = vrot.lane.b32.xlu0 %v2124_v1, %s2068_s24 }
  0x33   : > { %1229 = vrot.lane.b32.xlu1 %v2124_v1, %s2069_s25 }
  0x35   : > { %1233 = vrot.lane.b32.xlu0 %v1223_v8, %s2069_s25  ;;  %s2000_s25 = smul.u32 24, %s2288_s12 }
  0x37   : > { %1402 = vrot.lane.b32.xlu1 %v1392_v9, %s2070_s26  ;;  %s226_s28 = scalar_lea.vmem %s2282_s3, %s2000_s25 }
  0x39   : > { %1400 = vrot.lane.b32.xlu0 %v234_v2, %s2070_s26 }
  0x3b   : > { %1569 = vrot.lane.b32.xlu1 %v234_v2, %s2071_s27 }
  0x3d   : > { %1398 = vrot.lane.b32.xlu0 %v2124_v1, %s2070_s26 }
  0x3f   : > { %1567 = vrot.lane.b32.xlu1 %v2124_v1, %s2071_s27 }
  0x41   : > { %1571 = vrot.lane.b32.xlu0 %v1561_v10, %s2071_s27 }
  0x45   : > { %1732 = vperm.xlu0 %2036, %v1729_v11  }
  0x85   : > { %v236_v13 = vpop.permute.xlu1 %235 }
  0x87   : > { %v238_v14 = vpop.permute.xlu0 %237 }
  0x88   : > { %v242_v19 = vsel %vm241_vm2, %v236_v13, %v238_v14 }
  0x89   : > { %v556_v15 = vpop.permute.xlu1 %555 }
  0x8b   : > { %v240_v16 = vpop.permute.xlu0 %239 }
  0x8c   : > { %1939 = vmatpush3.msk.msra.mxu1 %vm248_vm1, %v240_v16  ;;  %v243_v17 = vsel %vm241_vm2, %v238_v14, %v240_v16 }
  0x8d   : > { %1866 = vmatprep.subr.msk.mxu0 %vm248_vm1, %v243_v17  ;;  %v554_v20 = vpop.permute.xlu1 %553  ;;  %1941 = vmatmul.mubr.msk.f32.vlgmr.msra.gmra.mrb[0].mxu1 %vm244_vm3, %v1865_v18 }
  0x8e   : > { %1867 = vmatpush1.msk.msra.mxu0 %vm248_vm1, %v242_v19  ;;  %1943 = vmatprep.subr.mxu1 %v2062_v0  ;;  %v560_v26 = vsel %vm559_vm4, %v554_v20, %v556_v15 }
  0x8f   : > { %1868 = vmatmul.mubr.msk.f32.vlgmr.msra.gmra.mrb[0].mxu0 %vm244_vm3, %v1865_v18  ;;  %1871 = vmatprep.subr.msk.mxu0 %vm248_vm1, %v234_v2  ;;  %v558_v21 = vpop.permute.xlu0 %557 }
  0x90   : > { %1872 = vmatpush1.msk.msra.mxu0 %vm248_vm1, %v2124_v1  ;;  %v561_v22 = vsel %vm559_vm4, %v556_v15, %v558_v21  ;;  %1944 = vmatpush3.msk.msra.mxu1 %vm248_vm1, %v2130_v3 }
  0x91   : > { %1877 = vmatprep.subr.msk.mxu0 %vm248_vm1, %v561_v22  ;;  %1945 = vmatprep.mubr.msk.f32.mxu1 %vm2063_vm0, %v2062_v0  ;;  %v727_v23 = vpop.permute.xlu1 %726 }
  0x92   : > { %1948 = vmatprep.subr.mxu1 %v2062_v0  ;;  %469 = vmatprep.mubr.f32.mxu0 %v2062_v0 }
  0x93   : > { %1946 = vmatmul.mubr.msk.f32.vlgmr.msra.gmra.mrb[2].mxu1 %vm244_vm3, %v229_v24  ;;  %v725_v25 = vpop.permute.xlu0 %724 }
  0x94   : > { %1949 = vmatpush3.msk.msra.mxu1 %vm248_vm1, %v558_v21  ;;  %1950 = vmatprep.mubr.msk.f32.mxu1 %vm2063_vm0, %v2062_v0  ;;  %v730_v28 = vsel %vm728_vm5, %v725_v25, %v727_v23 }
  0x95   : > { %1953 = vmatprep.subr.mxu1 %v2062_v0  ;;  %v894_v27 = vpop.permute.xlu1 %893 }
  0x97   : > { %1873 = vmatmul.mubr.msk.f32.vlgmr.msra.gmra.mrb[0].mxu0 %vm244_vm3, %v229_v24  ;;  %v723_v30 = vpop.permute.xlu0 %722  ;;  %1951 = vmatmul.mubr.msk.f32.vlgmr.msra.gmra.mrb[4].mxu1 %vm244_vm3, %v1876_v29 }
  0x98   : > { %1878 = vmatpush1.msk.msra.mxu0 %vm248_vm1, %v560_v26  ;;  %635 = vmatprep.mubr.f32.mxu0 %v2062_v0  ;;  %v729_v35 = vsel %vm728_vm5, %v723_v30, %v725_v25 }
  0x99   : > { %1883 = vmatprep.subr.msk.mxu0 %vm248_vm1, %v730_v28  ;;  %1954 = vmatpush3.msk.msra.mxu1 %vm248_vm1, %v727_v23  ;;  %v892_v32 = vpop.permute.xlu1 %891 }
  0x9a   : > { %1955 = vmatprep.mubr.msk.f32.mxu1 %vm2063_vm0, %v2062_v0  ;;  %1958 = vmatprep.subr.mxu1 %v2062_v0  ;;  %v898_v42 = vsel %vm897_vm6, %v892_v32, %v894_v27 }
  0x9b   : > { %v896_v33 = vpop.permute.xlu0 %895  ;;  %1956 = vmatmul.mubr.msk.f32.vlgmr.msra.gmra.mrb[6].mxu1 %vm244_vm3, %v1882_v31 }
  0x9c   : > { %1959 = vmatpush3.msk.msra.mxu1 %vm248_vm1, %v896_v33  ;;  %1960 = vmatprep.mubr.msk.f32.mxu1 %vm2063_vm0, %v2062_v0  ;;  %v899_v37 = vsel %vm897_vm6, %v894_v27, %v896_v33 }
  0x9d   : > { %v1065_v36 = vpop.permute.xlu1 %1064  ;;  %1963 = vmatprep.subr.mxu1 %v2062_v0 }
  0x9f   : > { %1879 = vmatmul.mubr.msk.f32.vlgmr.msra.gmra.mrb[0].mxu0 %vm244_vm3, %v1876_v29  ;;  %v1063_v38 = vpop.permute.xlu0 %1062  ;;  %1961 = vmatmul.mubr.msk.f32.vlgmr.msra.gmra.mrb[8].mxu1 %vm244_vm3, %v1888_v34 }
  0xa0   : > { %1884 = vmatpush1.msk.msra.mxu0 %vm248_vm1, %v729_v35  ;;  %804 = vmatprep.mubr.f32.mxu0 %v2062_v0  ;;  %v1068_v44 = vsel %vm1066_vm7, %v1063_v38, %v1065_v36 }
  0xa1   : > { %1889 = vmatprep.subr.msk.mxu0 %vm248_vm1, %v899_v37  ;;  %v1232_v40 = vpop.permute.xlu1 %1231  ;;  %1964 = vmatpush3.msk.msra.mxu1 %vm248_vm1, %v1065_v36 }
  0xa2   : > { %1965 = vmatprep.mubr.msk.f32.mxu1 %vm2063_vm0, %v2062_v0  ;;  %1968 = vmatprep.subr.mxu1 %v2062_v0 }
  0xa3   : > { %v1061_v41 = vpop.permute.xlu0 %1060  ;;  %1966 = vmatmul.mubr.msk.f32.vlgmr.msra.gmra.mrb[10].mxu1 %vm244_vm3, %v1894_v39 }
  0xa4   : > { %1970 = vmatprep.mubr.msk.f32.mxu1 %vm2063_vm0, %v2062_v0  ;;  %v1067_v50 = vsel %vm1066_vm7, %v1061_v41, %v1063_v38 }
  0xa5   : > { %v1230_v43 = vpop.permute.xlu1 %1229 }
  0xa6   : > { %v1236_v55 = vsel %vm1235_vm8, %v1230_v43, %v1232_v40 }
  0xa7   : > { %1885 = vmatmul.mubr.msk.f32.vlgmr.msra.gmra.mrb[0].mxu0 %vm244_vm3, %v1882_v31  ;;  %v1234_v45 = vpop.permute.xlu0 %1233 }
  0xa8   : > { %1890 = vmatpush1.msk.msra.mxu0 %vm248_vm1, %v898_v42  ;;  %973 = vmatprep.mubr.f32.mxu0 %v2062_v0  ;;  %v1237_v51 = vsel %vm1235_vm8, %v1232_v40, %v1234_v45 }
  0xa9   : > { %1895 = vmatprep.subr.msk.mxu0 %vm248_vm1, %v1068_v44  ;;  %1969 = vmatpush3.msk.msra.mxu1 %vm248_vm1, %v1234_v45  ;;  %v1403_v47 = vpop.permute.xlu1 %1402 }
  0xaa   : > { %1971 = vmatmul.mubr.msk.f32.vlgmr.msra.gmra.mrb[12].mxu1 %vm244_vm3, %v1900_v46  ;;  %1973 = vmatprep.subr.mxu1 %v2062_v0 }
  0xab   : > { %v1401_v48 = vpop.permute.xlu0 %1400  ;;  %1974 = vmatpush3.msk.msra.mxu1 %vm248_vm1, %v1403_v47  ;;  %1975 = vmatprep.mubr.msk.f32.mxu1 %vm2063_vm0, %v2062_v0 }
  0xac   : > { %1978 = vmatprep.subr.mxu1 %v2062_v0  ;;  %v1406_v56 = vsel %vm1404_vm9, %v1401_v48, %v1403_v47 }
  0xad   : > { %v1570_v57 = vpop.permute.xlu1 %1569 }
  0xae   : > { %1976 = vmatmul.mubr.msk.f32.vlgmr.msra.gmra.mrb[14].mxu1 %vm244_vm3, %v1906_v49 }
  0xaf   : > { %1891 = vmatmul.mubr.msk.f32.vlgmr.msra.gmra.mrb[0].mxu0 %vm244_vm3, %v1888_v34  ;;  %v1399_v52 = vpop.permute.xlu0 %1398  ;;  %1980 = vmatprep.mubr.msk.f32.mxu1 %vm2063_vm0, %v2062_v0 }
  0xb0   : > { %1896 = vmatpush1.msk.msra.mxu0 %vm248_vm1, %v1067_v50  ;;  %1142 = vmatprep.mubr.f32.mxu0 %v2062_v0  ;;  %v1405_v58 = vsel %vm1404_vm9, %v1399_v52, %v1401_v48 }
  0xb1   : > { %1901 = vmatprep.subr.msk.mxu0 %vm248_vm1, %v1237_v51  ;;  %v1568_v60 = vpop.permute.xlu1 %1567 }
  0xb2   : > { %v1574_v61 = vsel %vm1573_vm10, %v1568_v60, %v1570_v57 }
  0xb3   : > { %v1572_v54 = vpop.permute.xlu0 %1571 }
  0xb4   : > { %1979 = vmatpush3.msk.msra.mxu1 %vm248_vm1, %v1572_v54  ;;  %v1575_v59 = vsel %vm1573_vm10, %v1570_v57, %v1572_v54 }
  0xb5   : > { %1981 = vmatmul.mubr.msk.f32.vlgmr.msra.gmra.mrb[16].mxu1 %vm244_vm3, %v1912_v53 }
  0xb7   : > { %1897 = vmatmul.mubr.msk.f32.vlgmr.msra.gmra.mrb[0].mxu0 %vm244_vm3, %v1894_v39 }
  0xb8   : > { %1902 = vmatpush1.msk.msra.mxu0 %vm248_vm1, %v1236_v55  ;;  %1311 = vmatprep.mubr.f32.mxu0 %v2062_v0 }
  0xb9   : > { %1907 = vmatprep.subr.msk.mxu0 %vm248_vm1, %v1406_v56 }
  0xbf   : > { %1903 = vmatmul.mubr.msk.f32.vlgmr.msra.gmra.mrb[0].mxu0 %vm244_vm3, %v1900_v46 }
  0xc0   : > { %1908 = vmatpush1.msk.msra.mxu0 %vm248_vm1, %v1405_v58  ;;  %1480 = vmatprep.mubr.f32.mxu0 %v2062_v0 }
  0xc1   : > { %1913 = vmatprep.subr.msk.mxu0 %vm248_vm1, %v1575_v59 }
  0xc4   : > { %v1733_v22 = vpop.permute.xlu0 %1732 }
  0xc7   : > { %1909 = vmatmul.mubr.msk.f32.vlgmr.msra.gmra.mrb[0].mxu0 %vm244_vm3, %v1906_v49 }
  0xc8   : > { %1914 = vmatpush1.msk.msra.mxu0 %vm248_vm1, %v1574_v61  ;;  %1649 = vmatprep.mubr.f32.mxu0 %v2062_v0 }
  0xcf   : > { %1915 = vmatmul.mubr.msk.f32.vlgmr.msra.gmra.mrb[0].mxu0 %vm244_vm3, %v1912_v53 }
 0x160   : > { %v392_v62 = vpop.f32.mrb[0].mxu1 }
 0x161   : > { %v1942_v63 = vpop.f32.mrb[1].mxu1 }
 0x166   : > { %v542_v1 = vpop.f32.mrb[2].mxu1 }
 0x167   : > { %v543_v2 = vadd.f32 %v542_v1, %v392_v62  ;;  %v1947_v3 = vpop.f32.mrb[3].mxu1 }
 0x16a   : > { %v708_v4 = vpop.f32.mrb[4].mxu1 }
 0x16b   : > { %v714_v5 = vadd.f32 %v708_v4, %v543_v2  ;;  %v1952_v6 = vpop.f32.mrb[5].mxu1 }
 0x16e   : > { %v877_v7 = vpop.f32.mrb[6].mxu1 }
 0x16f   : > { %v883_v8 = vadd.f32 %v877_v7, %v714_v5  ;;  %v1957_v9 = vpop.f32.mrb[7].mxu1 }
 0x172   : > { %v1046_v10 = vpop.f32.mrb[8].mxu1 }
 0x173   : > { %v1052_v11 = vadd.f32 %v1046_v10, %v883_v8  ;;  %v1962_v12 = vpop.f32.mrb[9].mxu1 }
 0x176   : > { %v1215_v13 = vpop.f32.mrb[10].mxu1 }
 0x177   : > { %v1221_v14 = vadd.f32 %v1215_v13, %v1052_v11  ;;  %v1967_v0 = vpop.f32.mrb[11].mxu1 }
 0x17d   : > { %v1384_v15 = vpop.f32.mrb[12].mxu1 }
 0x17e   : > { %v1390_v16 = vadd.f32 %v1384_v15, %v1221_v14  ;;  %v1972_v17 = vpop.f32.mrb[13].mxu1 }
 0x181   : > { %v1553_v18 = vpop.f32.mrb[14].mxu1 }
 0x182   : > { %v1559_v19 = vadd.f32 %v1553_v18, %v1390_v16  ;;  %v1977_v20 = vpop.f32.mrb[15].mxu1 }
 0x188   : > { %v1722_v21 = vpop.f32.mrb[16].mxu1 }
 0x189   : > { %v1728_v23 = vadd.f32 %v1722_v21, %v1559_v19  ;;  %v1982_v24 = vpop.f32.mrb[17].mxu1 }
 0x18b   : > { %v1737_v25 = vadd.f32 %v1733_v22, %v1728_v23 }
 0x18d   : > { %1741 = vst.msk [vmem:[%s226_s28 + $0x10] sm:$0xff] %vm1740_vm11, %v1737_v25 }
 0x1a2   : > { %v1651_v26 = vpop.f32.mrb[0].mxu0 }
 0x1a3   : > { %v1735_v27 = vadd.f32 %v1733_v22, %v1651_v26  ;;  %v1653_v28 = vpop.f32.mrb[1].mxu0 }
 0x1a4   : > { %v1736_v29 = vadd.f32 %v1733_v22, %v1653_v28 }
 0x1a5   : > { %1738 = vst [vmem:[%s226_s28] sm:$0xff] %v1735_v27 }
 0x1a6   : > { %1739 = vst [vmem:[%s226_s28 + $0x8] sm:$0xff] %v1736_v29 }
 0x1a7 PF: > { %s13_s14 = sadd.s32 1, %s2060_s14   ;;  %s2283_s12 = smov %s2056_s13 }
 0x1a8   : > { %p10_p5 = scmp.ge.s32.totalorder %s13_s14, 4   ;;  %s2284_s13 = smov %s2286_s15 }
 0x1aa   :  { %12 = sbr.rel (!%p10_p5) target bundleno = 2 (0x2), region = 76 }

</bundles_post_ra>
